<compile_context>
chip_gen: v7x
topology: tpu7x:2x2x1
jax: 0.10.0
libtpu: 0.0.40
codegen_flags: <defaults>
</compile_context>

<pallas_src>
import functools

import jax
import jax.numpy as jnp
from jax import lax
from jax.experimental import pallas as pl
from jax.experimental.pallas import tpu as pltpu


# ----------------------------------------------------------------------------
# Kernel bodies
# ----------------------------------------------------------------------------
def _relu_bn(y, mask_ref, p_ref, o_ref, count, eps):
    """Shared tail: bias + ReLU + train-mode BatchNorm1d (two-pass variance)."""
    mask = mask_ref[...]                              # (1, N) f32, 1.0 on valid cols
    p = p_ref[...].astype(jnp.float32)                # (Ct, 3) = [bias, gamma, beta]
    bias, gamma, beta = p[:, 0:1], p[:, 1:2], p[:, 2:3]

    y = jnp.maximum(y + bias, 0.0) * mask             # ReLU; zero padded/invalid cols

    inv_cnt = 1.0 / count                             # count = B * L_out (valid cols)
    mean = jnp.sum(y, axis=1, keepdims=True) * inv_cnt
    d = (y - mean) * mask                             # two-pass variance, masked
    var = jnp.sum(d * d, axis=1, keepdims=True) * inv_cnt

    scale = gamma * lax.rsqrt(var + eps)
    shift = beta - mean * scale
    o_ref[...] = (y * scale + shift).astype(o_ref.dtype)


def _tdnn_kernel_fused(x_ref, mask_ref, w_ref, p_ref, o_ref, *,
                       k_size, dilation, count, eps):
    """Small C_in: fused im2col, single MXU contraction over K*C_in.

      x_ref    : (C_in, N)        mxu dtype, N = round_up(B*L, 128), contiguous B*L
      mask_ref : (1, N)           f32 validity mask
      w_ref    : (Ct, K*C_in)     tap-major weight tile (k*C_in + i), mxu dtype
      p_ref    : (Ct, 3)          packed [bias, gamma, beta] (f32)
      o_ref    : (Ct, N)          lane-dense output tile
    """
    _, n = x_ref.shape
    x = x_ref[...]                                    # already in MXU dtype
    taps = [x]
    for k in range(1, k_size):
        # tap k of column j reads input column j + k*dilation (XLU rotate,
        # overlaps MXU work); wrapped columns are invalid and masked.
        taps.append(pltpu.roll(x, shift=n - k * dilation, axis=1))
    x_col = jnp.concatenate(taps, axis=0)             # (K*C_in, N), small at C_in<128
    y = jnp.dot(w_ref[...], x_col, preferred_element_type=jnp.float32)
    _relu_bn(y, mask_ref, p_ref, o_ref, count, eps)


def _tdnn_kernel_accum(x_ref, mask_ref, w_ref, p_ref, o_ref, *,
                       k_size, dilation, count, eps):
    """Large C_in: no concat / no staging buffer; accumulate K matmuls.

      w_ref : (K, Ct, C_in)  tap-major-leading weight tile, mxu dtype
    """
    _, n = x_ref.shape
    x = x_ref[...]
    y = jnp.dot(w_ref[0], x, preferred_element_type=jnp.float32)
    for k in range(1, k_size):
        xk = pltpu.roll(x, shift=n - k * dilation, axis=1)
        y = y + jnp.dot(w_ref[k], xk, preferred_element_type=jnp.float32)
    _relu_bn(y, mask_ref, p_ref, o_ref, count, eps)


# ----------------------------------------------------------------------------
# Tiling / VMEM helpers
# ----------------------------------------------------------------------------
def _pick_c_tile(c_out: int, max_tile: int = 256) -> int:
    """Never force >1 grid step; split only when c_out exceeds max_tile."""
    if c_out <= max_tile:
        return c_out
    # Prefer an even number of grid steps (balances the two v7x TensorCores).
    for even_only in (True, False):
        for t in range(max_tile, 7, -8):
            if c_out % t == 0 and (not even_only or (c_out // t) % 2 == 0):
                return t
    return c_out


def _vmem_limit_bytes(need: int) -> int:
    """Cap the VMEM request at 3/4 of the device VMEM (64 MiB/TC on v7x)."""
    try:
        cap = int(pltpu.get_tpu_info().vmem_capacity_bytes)
    except Exception:
        cap = 64 * 1024 * 1024          # assume the smallest generation (v7x)
    return int(min(max(need, 32 * 1024 * 1024), cap * 3 // 4))


# ----------------------------------------------------------------------------
# Wrapper
# ----------------------------------------------------------------------------
def tdnn_block(x, w, b, gamma, beta, *, dilation: int, eps: float = 1e-5,
               mxu_dtype=jnp.float32, out_dtype=None):
    """x: (B, C_in, L) NCL; returns (B, C_out, L - dilation*(K-1)).

    NOTE: if TDNN blocks are stacked, the NCL <-> channel-major transposes
    below should be hoisted to the network boundary (layout plumbing only).
    """
    B, c_in, L = x.shape
    c_out, c_in_w, K = w.shape
    # TODO(synk): groups != 1 (grouped Conv1d) not implemented in this kernel.
    assert c_in_w == c_in, "groups != 1 not supported"
    l_out = L - dilation * (K - 1)
    assert l_out > 0, "kernel/dilation too large for input length"
    out_dtype = x.dtype if out_dtype is None else out_dtype

    LANE = 128
    n_cols = B * L
    n = ((n_cols + LANE - 1) // LANE) * LANE          # contiguous B*L, padded to 128

    # ---- layout plumbing: channel-major, lane-dense, MXU dtype in HBM -------
    x_flat = jnp.transpose(x, (1, 0, 2)).reshape(c_in, n_cols)
    x_flat = jnp.pad(x_flat, ((0, 0), (0, n - n_cols))).astype(mxu_dtype)

    col = jnp.arange(n)
    mask = ((col < n_cols) & ((col % L) < l_out)).astype(jnp.float32).reshape(1, n)

    # bias / gamma / beta packed into one small array -> one DMA per step
    params = jnp.stack([b, gamma, beta], axis=1).astype(jnp.float32)  # (c_out, 3)

    c_tile = _pick_c_tile(c_out)
    grid_steps = c_out // c_tile
    count = float(B * l_out)

    fused = c_in < 128     # small contraction: fused im2col is cheap & MXU-friendly
    if fused:
        # tap-major: w2[o, k*C_in + i] = w[o, i, k]
        w2 = jnp.transpose(w, (0, 2, 1)).reshape(c_out, K * c_in).astype(mxu_dtype)
        w_spec = pl.BlockSpec((c_tile, K * c_in), lambda i: (i, 0))
        kernel = functools.partial(_tdnn_kernel_fused, k_size=K,
                                   dilation=dilation, count=count, eps=eps)
    else:
        # tap-leading: w2[k, o, i] = w[o, i, k]; avoids unaligned lane slicing
        w2 = jnp.transpose(w, (2, 0, 1)).astype(mxu_dtype)            # (K, c_out, c_in)
        w_spec = pl.BlockSpec((K, c_tile, c_in), lambda i: (0, i, 0))
        kernel = functools.partial(_tdnn_kernel_accum, k_size=K,
                                   dilation=dilation, count=count, eps=eps)

    def _shared_spec(shape):
        index_map = lambda i: (0, 0)
        if grid_steps > 1:
            # Grid-invariant input: single-buffer it (its block never changes),
            # saving one full copy of VMEM. Irrelevant when grid == 1.
            try:
                return pl.BlockSpec(shape, index_map,
                                    pipeline_mode=pl.Buffered(buffer_count=1))
            except Exception:
                pass
        return pl.BlockSpec(shape, index_map)

    # ---- VMEM footprint estimate (drives vmem_limit_bytes) ------------------
    isz_x = jnp.dtype(mxu_dtype).itemsize
    isz_o = jnp.dtype(out_dtype).itemsize
    need = (c_in * n * isz_x                      # x (single-buffered / grid==1)
            + 8 * n * 4                           # mask (sublane-padded)
            + 2 * c_tile * (K * c_in) * isz_x     # weight tile (double-buffered)
            + 2 * c_tile * 128 * 4                # packed params (lane-padded)
            + 2 * c_tile * n * isz_o              # output tile (double-buffered)
            + (K * c_in * n * isz_x if fused else c_in * n * isz_x)  # staging/roll
            + 3 * c_tile * n * 4)                 # f32 temporaries (y, d, ...)
    vmem_limit = _vmem_limit_bytes(int(need * 5 // 4))

    flops = 2 * B * l_out * c_in * c_out * K + 8 * c_out * n
    bytes_accessed = (c_in * n * isz_x + n * 4 + c_out * K * c_in * isz_x
                      + c_out * 3 * 4 + c_out * n * isz_o)

    out_flat = pl.pallas_call(
        kernel,
        out_shape=jax.ShapeDtypeStruct((c_out, n), out_dtype),
        grid=(grid_steps,),
        in_specs=[
            _shared_spec((c_in, n)),                          # x      (shared)
            _shared_spec((1, n)),                             # mask   (shared)
            w_spec,                                           # weight tile
            pl.BlockSpec((c_tile, 3), lambda i: (i, 0)),      # bias/gamma/beta
        ],
        out_specs=pl.BlockSpec((c_tile, n), lambda i: (i, 0)),
        compiler_params=pltpu.CompilerParams(
            dimension_semantics=("parallel",),
            vmem_limit_bytes=vmem_limit),
        cost_estimate=pl.CostEstimate(
            flops=int(flops), transcendentals=int(c_out),
            bytes_accessed=int(bytes_accessed)),
    )(x_flat, mask, w2, params)

    # restore NCL layout, drop lane padding and invalid conv positions
    out = out_flat[:, :n_cols].reshape(c_out, B, L)[:, :, :l_out]
    return jnp.transpose(out, (1, 0, 2))


# ----------------------------------------------------------------------------
# Pure-JAX reference (torch Conv1d(valid) + ReLU + train-mode BatchNorm1d)
# ----------------------------------------------------------------------------
def tdnn_block_ref(x, w, b, gamma, beta, *, dilation: int, eps: float = 1e-5):
    y = lax.conv_general_dilated(
        x.astype(jnp.float32), w.astype(jnp.float32),
        window_strides=(1,), padding="VALID", rhs_dilation=(dilation,),
        dimension_numbers=("NCH", "OIH", "NCH"))
    y = y + b[None, :, None]
    y = jnp.maximum(y, 0.0)
    mean = jnp.mean(y, axis=(0, 2), keepdims=True)
    var = jnp.mean((y - mean) ** 2, axis=(0, 2), keepdims=True)
    y = (y - mean) * lax.rsqrt(var + eps)
    return y * gamma[None, :, None] + beta[None, :, None]


# TODO(synk): BatchNorm1d running_mean / running_var momentum updates (training
# side effect) are not produced; the forward output does not depend on them.

if __name__ == "__main__":
    def run_case(name, B, c_in, c_out, L, K, dil, mxu_dtype, out_dtype,
                 atol, rtol, key):
        kx, kw, kb, kg, kbe = jax.random.split(key, 5)
        x = jax.random.normal(kx, (B, c_in, L), dtype=jnp.float32)
        bound = 1.0 / (c_in * K) ** 0.5          # Conv1d default init range
        w = jax.random.uniform(kw, (c_out, c_in, K), jnp.float32, -bound, bound)
        b = jax.random.uniform(kb, (c_out,), jnp.float32, -bound, bound)
        gamma = 1.0 + 0.1 * jax.random.normal(kg, (c_out,), dtype=jnp.float32)
        beta = 0.1 * jax.random.normal(kbe, (c_out,), dtype=jnp.float32)

        ref = tdnn_block_ref(x, w, b, gamma, beta, dilation=dil)
        out = jax.block_until_ready(
            tdnn_block(x, w, b, gamma, beta, dilation=dil,
                       mxu_dtype=mxu_dtype, out_dtype=out_dtype))
        l_out = L - dil * (K - 1)
        assert out.shape == (B, c_out, l_out), (name, out.shape)
        out_f32 = out.astype(jnp.float32)
        err = float(jnp.max(jnp.abs(out_f32 - ref)))
        assert jnp.allclose(out_f32, ref, atol=atol, rtol=rtol), (name, err)

    key = jax.random.PRNGKey(0)
    k1, k2 = jax.random.split(key)

    # 1) small C_in -> fused single-matmul im2col path (exact f32)
    run_case("fused_f32", 2, 16, 16, 32, 3, 2,
             jnp.float32, None, 1e-3, 1e-3, k1)
    # 2) same config with bf16 MXU operands + bf16 output (v6e/v7x fast path)
    run_case("fused_bf16", 2, 16, 16, 32, 3, 2,
             jnp.bfloat16, jnp.bfloat16, 1e-1, 1e-1, k1)
    # 3) C_in >= 128 -> no-concat K-matmul accumulation path (exact f32)
    run_case("accum_f32", 2, 128, 64, 50, 3, 3,
             jnp.float32, None, 1e-3, 1e-3, k2)

    print("KERNEL_OK")
</pallas_src>

<mosaic_0001>
module attributes {stable_mosaic.version = 11 : i64} {
  func.func @_tdnn_kernel_fused(%arg0: i32, %arg1: memref<16x128xf32, #tpu.memory_space<vmem>>, %arg2: memref<1x128xf32, #tpu.memory_space<vmem>>, %arg3: memref<16x48xf32, #tpu.memory_space<vmem>>, %arg4: memref<16x3xf32, #tpu.memory_space<vmem>>, %arg5: memref<16x128xf32, #tpu.memory_space<vmem>>) attributes {dimension_semantics = [#tpu.dimension_semantics<parallel>], iteration_bounds = array<i64: 1>, scalar_prefetch = 0 : i64, scratch_operands = 0 : i64, tpu.core_type = #tpu.core_type<tc>, window_params = [{pipeline_mode = #tpu.pipeline_mode<synchronous>, transform_indices = @transform_0, window_bounds = array<i64: 16, 128>}, {pipeline_mode = #tpu.pipeline_mode<synchronous>, transform_indices = @transform_1, window_bounds = array<i64: 1, 128>}, {transform_indices = @transform_2, window_bounds = array<i64: 16, 48>}, {transform_indices = @transform_3, window_bounds = array<i64: 16, 3>}, {transform_indices = @transform_4, window_bounds = array<i64: 16, 128>}]} {
    %c0 = arith.constant 0 : index
    %c0_0 = arith.constant 0 : index
    %0 = vector.load %arg1[%c0, %c0_0] : memref<16x128xf32, #tpu.memory_space<vmem>>, vector<16x128xf32>
    %c126_i32 = arith.constant 126 : i32
    %1 = tpu.dynamic_rotate %0 by %c126_i32 dim 1 : vector<16x128xf32>, i32 -> vector<16x128xf32>
    %c124_i32 = arith.constant 124 : i32
    %2 = tpu.dynamic_rotate %0 by %c124_i32 dim 1 : vector<16x128xf32>, i32 -> vector<16x128xf32>
    %3 = tpu.concatenate %0, %1, %2 in 0 : vector<16x128xf32>, vector<16x128xf32>, vector<16x128xf32> -> vector<48x128xf32>
    %c0_1 = arith.constant 0 : index
    %c0_2 = arith.constant 0 : index
    %4 = vector.load %arg3[%c0_1, %c0_2] : memref<16x48xf32, #tpu.memory_space<vmem>>, vector<16x48xf32>
    %cst = arith.constant dense<0.000000e+00> : vector<16x128xf32>
    %5 = tpu.matmul %4, %3, %cst {dimension_numbers = #tpu.dot_dimension_numbers<[1], [0], [0], [1], [0, 0, 1, 1], [], []>} : vector<16x48xf32>, vector<48x128xf32>, vector<16x128xf32> -> vector<16x128xf32>
    %c0_3 = arith.constant 0 : index
    %c0_4 = arith.constant 0 : index
    %6 = vector.load %arg2[%c0_3, %c0_4] : memref<1x128xf32, #tpu.memory_space<vmem>>, vector<1x128xf32>
    %c0_5 = arith.constant 0 : index
    %c0_6 = arith.constant 0 : index
    %7 = vector.load %arg4[%c0_5, %c0_6] : memref<16x3xf32, #tpu.memory_space<vmem>>, vector<16x3xf32>
    %8 = vector.extract_strided_slice %7 {offsets = [0, 0], sizes = [16, 1], strides = [1, 1]} : vector<16x3xf32> to vector<16x1xf32>
    %9 = vector.extract_strided_slice %7 {offsets = [0, 1], sizes = [16, 1], strides = [1, 1]} : vector<16x3xf32> to vector<16x1xf32>
    %10 = vector.extract_strided_slice %7 {offsets = [0, 2], sizes = [16, 1], strides = [1, 1]} : vector<16x3xf32> to vector<16x1xf32>
    %11 = vector.broadcast %8 : vector<16x1xf32> to vector<16x128xf32>
    %12 = arith.addf %5, %11 : vector<16x128xf32>
    %cst_7 = arith.constant 0.000000e+00 : f32
    %13 = vector.broadcast %cst_7 : f32 to vector<16x128xf32>
    %14 = arith.maximumf %12, %13 : vector<16x128xf32>
    %15 = vector.broadcast %6 : vector<1x128xf32> to vector<16x128xf32>
    %16 = arith.mulf %14, %15 : vector<16x128xf32>
    %cst_8 = arith.constant dense<0.000000e+00> : vector<16xf32>
    %17 = vector.multi_reduction <add>, %16, %cst_8 [1] : vector<16x128xf32> to vector<16xf32>
    %18 = vector.shape_cast %17 : vector<16xf32> to vector<16x1xf32>
    %cst_9 = arith.constant 0.0178571437 : f32
    %19 = vector.broadcast %cst_9 : f32 to vector<16x1xf32>
    %20 = arith.mulf %18, %19 : vector<16x1xf32>
    %21 = vector.broadcast %20 : vector<16x1xf32> to vector<16x128xf32>
    %22 = arith.subf %16, %21 : vector<16x128xf32>
    %23 = vector.broadcast %6 : vector<1x128xf32> to vector<16x128xf32>
    %24 = arith.mulf %22, %23 : vector<16x128xf32>
    %25 = arith.mulf %24, %24 : vector<16x128xf32>
    %cst_10 = arith.constant dense<0.000000e+00> : vector<16xf32>
    %26 = vector.multi_reduction <add>, %25, %cst_10 [1] : vector<16x128xf32> to vector<16xf32>
    %27 = vector.shape_cast %26 : vector<16xf32> to vector<16x1xf32>
    %cst_11 = arith.constant 0.0178571437 : f32
    %28 = vector.broadcast %cst_11 : f32 to vector<16x1xf32>
    %29 = arith.mulf %27, %28 : vector<16x1xf32>
    %cst_12 = arith.constant 9.99999974E-6 : f32
    %30 = vector.broadcast %cst_12 : f32 to vector<16x1xf32>
    %31 = arith.addf %29, %30 : vector<16x1xf32>
    %32 = math.rsqrt %31 : vector<16x1xf32>
    %33 = arith.mulf %9, %32 : vector<16x1xf32>
    %34 = arith.mulf %20, %33 : vector<16x1xf32>
    %35 = arith.subf %10, %34 : vector<16x1xf32>
    %36 = vector.broadcast %33 : vector<16x1xf32> to vector<16x128xf32>
    %37 = arith.mulf %16, %36 : vector<16x128xf32>
    %38 = vector.broadcast %35 : vector<16x1xf32> to vector<16x128xf32>
    %39 = arith.addf %37, %38 : vector<16x128xf32>
    %c0_13 = arith.constant 0 : index
    %c0_14 = arith.constant 0 : index
    %40 = vector.load %arg5[%c0_13, %c0_14] : memref<16x128xf32, #tpu.memory_space<vmem>>, vector<16x128xf32>
    tpu.vector_store %arg5[%c0_13, %c0_14], %39 {strides = array<i32>} : memref<16x128xf32, #tpu.memory_space<vmem>>, vector<16x128xf32>,
    return
  }
  func.func @transform_0(%arg0: i32) -> (i32, i32) {
    %c0_i32 = arith.constant 0 : i32
    %c0_i32_0 = arith.constant 0 : i32
    %c0_i32_1 = arith.constant 0 : i32
    return %c0_i32, %c0_i32_0 : i32, i32
  }
  func.func @transform_1(%arg0: i32) -> (i32, i32) {
    %c0_i32 = arith.constant 0 : i32
    %c0_i32_0 = arith.constant 0 : i32
    %c0_i32_1 = arith.constant 0 : i32
    return %c0_i32, %c0_i32_0 : i32, i32
  }
  func.func @transform_2(%arg0: i32) -> (i32, i32) {
    %c0_i32 = arith.constant 0 : i32
    %c0_i32_0 = arith.constant 0 : i32
    return %arg0, %c0_i32 : i32, i32
  }
  func.func @transform_3(%arg0: i32) -> (i32, i32) {
    %c0_i32 = arith.constant 0 : i32
    %c0_i32_0 = arith.constant 0 : i32
    return %arg0, %c0_i32 : i32, i32
  }
  func.func @transform_4(%arg0: i32) -> (i32, i32) {
    %c0_i32 = arith.constant 0 : i32
    %c0_i32_0 = arith.constant 0 : i32
    return %arg0, %c0_i32 : i32, i32
  }
}

</mosaic_0001>

<bundles_post_ra>
// kernel: tpu_custom_call.1
= control target key start
LH: loop header
LB: loop body
LE: loop exit
PB: predicated region body
PF: predicated region fallthrough
CT: control target
= control target key end

     0   :  { %9 = vsyncpa [#allocation3], 0  ;;  %s434_s0 = inlined_call_operand.vmem [shape: f32[16,128], index: 0, kind: input, shape index: {}]   ;;  %s435_s1 = inlined_call_operand.vmem [shape: f32[1,128], index: 1, kind: input, shape index: {}]   ;;  %s436_s2 = inlined_call_operand.hbm [shape: f32[16,48], index: 2, kind: input, shape index: {}]   ;;  %s437_s3 = inlined_call_operand.vmem [shape: f32[16,3], index: 3, kind: input, shape index: {}]   ;;  %s438_s4 = inlined_call_operand.hbm [shape: f32[16,128], index: 4, kind: output, shape index: {}]  }
   0x1   :  { %10 = vsyncpa [#allocation4], 0  ;;  %s342_s15 = smov [#allocation2]   ;;  %s294_s19 = scalar_lea.hbm %s436_s2, 256 }
   0x2   :  { %s20_s16 = sshll.u32 %s342_s15, 4  ;;  %p295_p0 = scmp.ne.s32.totalorder %s436_s2, %s294_s19  ;;  %s21_s16 = int_to_ptr.vmem [resolvable:$true] %s20_s16 }
   0x3   :  { %p298_p1 = scmp.lt.u32.totalorder %s294_s19, %s436_s2 }
   0x5   :  { %p300_p2 = pnand %p298_p1, %p295_p0 }
   0x7   :  { %303 = shalt.err (!%p300_p2)
}
   0x8   :  { %s304_s24 = scalar_lea.vmem %s21_s16, 256  ;;  %p309_p4 = scmp.lt.s32.totalorder %s21_s16, %s21_s16 }
   0x9   :  { %p305_p3 = scmp.ne.s32.totalorder %s21_s16, %s304_s24  ;;  %p310_p5 = scmp.lt.s32.totalorder %s304_s24, %s304_s24 }
   0xb   :  { %p311_p6 = por %p310_p5, %p309_p4 }
   0xd   :  { %p312_p7 = pnand %p311_p6, %p305_p3 }
   0xf   :  { %315 = shalt.err (!%p312_p7)
}
  0x10   :  { %s343_s25 = smov 128   ;;  %s344_s26 = smov 8  }
  0x11   :  { %26 = dma.hbm_to_vmem [thread:$0]  %s436_s2, 256, %s21_s16, [#allocation3], %s343_s25, %s343_s25, %s344_s26  }
  0x12   :  { %338 = dma.done.wait [#allocation3], 256  }
  0x13   :  { %339 = vsyncadd [#allocation3], 4294967040  ;;  %vm57_vm0 = vcmask 392192   ;;  %v32_v0 = vld [vmem:[%s434_s0] sm:$0xff]  ;;  %v33_v1 = vld [vmem:[%s434_s0 + $0x8] sm:$0xff]  ;;  %s345_s2 = smov 126  }
  0x14   :  { %v42_v2 = vld [vmem:[#allocation2] sm:$0xff]  ;;  %v276_v3 = vpack.i.bf16 %v33_v1, %v32_v0  ;;  %v254_v4 = vpack.c.bf16 %v33_v1, %v32_v0  ;;  %v346_v6 = vmov 0   ;;  %v408_v7 = vld [vmem:[%s437_s3 + $0x8] sm:$0xff]  ;;  %s347_s10 = smov 124   ;;  %v348_v38 = vmov 1   ;;  %s351_s12 = smov [#allocation5]  }
  0x15   :  { %251 = vmatprep.mubr.msk.f32.mxu0 %vm57_vm0, %v42_v2  ;;  %v402_v5 = vld [vmem:[%s437_s3] sm:$0xff]  ;;  %286 = vset.pattern.permute.xlu1 %v346_v6  ;;  %v43_v16 = vld [vmem:[#allocation2 + $0x8] sm:$0xff]  ;;  %v349_v45 = vmov 2   ;;  %s216_s13 = sshll.u32 %s351_s12, 4  ;;  %s217_s13 = int_to_ptr.vmem [resolvable:$true] %s216_s13 }
  0x16   :  { %277 = vrot.lane.b32.xlu0 %v276_v3, %s345_s2  ;;  %255 = vmatprep.subr.bf16.mxu0 %v254_v4  ;;  %v230_v22 = vld [vmem:[%s435_s1] ss:$0 sm:$0xff]  ;;  %s350_s1 = smov 1   ;;  %s316_s14 = scalar_lea.vmem %s217_s13, 256 }
  0x17   :  { %257 = vmatpush3.bf16.msra.mxu0 %v254_v4  ;;  %49 = vperm.xlu1 %286, %v402_v5   ;;  %p317_p8 = scmp.ne.s32.totalorder %s217_s13, %s316_s14  ;;  %p321_p9 = scmp.lt.s32.totalorder %s217_s13, %s217_s13 }
  0x18   :  { %288 = vset.pattern.permute.xlu0 %v349_v45  ;;  %p322_p10 = scmp.lt.s32.totalorder %s316_s14, %s316_s14 }
  0x1a   :  { %282 = vrot.lane.b32.xlu0 %v276_v3, %s347_s10  ;;  %p323_p11 = por %p322_p10, %p321_p9 }
  0x1b   :  { %54 = vperm.xlu1 %286, %v408_v7  }
  0x1c   :  { %p324_p12 = pnand %p323_p11, %p317_p8 }
  0x1f   :  { %287 = vset.pattern.permute.xlu1 %v348_v38 }
  0x88   :  { %v278_v8 = vpop.permute.xlu0 %277 }
  0x89   :  { %v280_v9 = vunpack.i.h.bf16 %v278_v8  ;;  %v279_v10 = vunpack.i.l.bf16 %v278_v8 }
  0x8b   :  { %v258_v11 = vpack.c.bf16 %v280_v9, %v279_v10 }
  0x8c   :  { %v283_v12 = vpop.permute.xlu0 %282 }
  0x8d   :  { %v285_v13 = vunpack.i.h.bf16 %v283_v12  ;;  %v284_v14 = vunpack.i.l.bf16 %v283_v12  ;;  %259 = vmatprep.subr.bf16.mxu0 %v258_v11 }
  0x8e   :  { %261 = vmatpush3.bf16.msra.mxu0 %v258_v11 }
  0x8f   :  { %v262_v15 = vpack.c.bf16 %v285_v13, %v284_v14 }
  0x91   :  { %263 = vmatprep.subr.bf16.mxu0 %v262_v15 }
  0x92   :  { %265 = vmatpush3.bf16.msra.mxu0 %v262_v15 }
  0x95   :  { %252 = vmatmul.mubr.msk.f32.vlgmr.msra.gmra.mrb[0].mxu0 %vm57_vm0, %v43_v16 }
  0x96   :  { %v50_v17 = vpop.permute.xlu1 %49 }
  0x9a   :  { %v55_v18 = vpop.permute.xlu1 %54 }
 0x168   :  { %v253_v19 = vpop.f32.mrb[0].mxu0 }
 0x169   :  { %v136_v20 = vadd.f32 %v253_v19, %v55_v18  ;;  %v130_v21 = vpop.f32.mrb[1].mxu0 }
 0x16a   :  { %v131_v23 = vadd.f32 %v130_v21, %v50_v17 }
 0x16b   :  { %v140_v24 = vmax.f32 %v136_v20, 0.0 }
 0x16c   :  { %v139_v25 = vmax.f32 %v131_v23, 0.0 }
 0x16d   :  { %v148_v26 = vmul.f32 %v230_v22, %v140_v24 }
 0x16e   :  { %v147_v27 = vmul.f32 %v230_v22, %v139_v25 }
 0x16f   :  { %151 = vadd.xlane.f32.xlu1 %v148_v26 }
 0x170   :  { %149 = vadd.xlane.f32.xlu0 %v147_v27 }
 0x1fc   :  { %v152_v28 = vpop.xlane.xlu1 %151 }
 0x1fd   :  { %v154_v29 = vmul.f32 0.017857144, %v152_v28  ;;  %v150_v30 = vpop.xlane.xlu0 %149 }
 0x1fe   :  { %v153_v31 = vmul.f32 0.017857144, %v150_v30 }
 0x1ff   :  { %v156_v32 = vsub.f32 %v148_v26, %v154_v29 }
 0x200   :  { %v155_v33 = vsub.f32 %v147_v27, %v153_v31 }
 0x201   :  { %v158_v36 = vmul.f32 %v230_v22, %v156_v32 }
 0x202   :  { %v157_v34 = vmul.f32 %v230_v22, %v155_v33 }
 0x203   :  { %v160_v37 = vmul.f32 %v158_v36, %v158_v36 }
 0x204   :  { %v159_v35 = vmul.f32 %v157_v34, %v157_v34 }
 0x206   :  { %161 = vadd.xlane.f32.xlu0 %v159_v35 }
 0x20a   :  { %163 = vadd.xlane.f32.xlu0 %v160_v37 }
 0x293   :  { %v162_v39 = vpop.xlane.xlu0 %161 }
 0x294   :  { %v165_v40 = vmul.f32 0.017857144, %v162_v39 }
 0x296   :  { %v167_v41 = vadd.f32 1e-05, %v165_v40 }
 0x297   :  { %v164_v42 = vpop.xlane.xlu0 %163 }
 0x298   :  { %290 = vrsqrt.f32 %v167_v41  ;;  %v166_v43 = vmul.f32 0.017857144, %v164_v42 }
 0x29a   :  { %v168_v44 = vadd.f32 1e-05, %v166_v43 }
 0x29c   :  { %292 = vrsqrt.f32 %v168_v44 }
 0x2a2   :  { %v291_v46 = vpop.eup %290 }
 0x2a3   :  { %v171_v47 = vmul.f32 %v291_v46, %v402_v5 }
 0x2a5   :  { %v173_v48 = vmul.f32 %v171_v47, %v153_v31 }
 0x2a6   :  { %v293_v49 = vpop.eup %292 }
 0x2a7   :  { %177 = vrot.lane.b32.xlu1 %v173_v48, %s350_s1  ;;  %v172_v50 = vmul.f32 %v293_v49, %v408_v7 }
 0x2a9   :  { %v174_v51 = vmul.f32 %v172_v50, %v154_v29 }
 0x2ab   :  { %187 = vperm.xlu1 %287, %v171_v47   ;;  %179 = vrot.lane.b32.xlu0 %v174_v51, %s350_s1 }
 0x2af   :  { %192 = vperm.xlu1 %287, %v172_v50  }
 0x2b3   :  { %289 = vset.pattern.permute.xlu1 %v349_v45 }
 0x319   :  { %v178_v52 = vpop.permute.xlu1 %177 }
 0x31a   :  { %v183_v53 = vsub.f32 %v402_v5, %v178_v52 }
 0x31c   :  { %199 = vperm.xlu0 %288, %v183_v53  }
 0x31d   :  { %v180_v54 = vpop.permute.xlu0 %179 }
 0x31e   :  { %v184_v55 = vsub.f32 %v408_v7, %v180_v54 }
 0x320   :  { %204 = vperm.xlu1 %289, %v184_v55  }
 0x32a   :  { %v188_v56 = vpop.permute.xlu1 %187 }
 0x32b   :  { %v195_v57 = vmul.f32 %v188_v56, %v147_v27 }
 0x32e   :  { %v193_v58 = vpop.permute.xlu1 %192 }
 0x32f   :  { %v196_v61 = vmul.f32 %v193_v58, %v148_v26 }
 0x39b   :  { %v200_v59 = vpop.permute.xlu0 %199 }
 0x39c   :  { %v207_v60 = vadd.f32 %v200_v59, %v195_v57 }
 0x39e   :  { %209 = vst [vmem:[#allocation5] sm:$0xff] %v207_v60 }
 0x39f   :  { %v205_v62 = vpop.permute.xlu1 %204 }
 0x3a0   :  { %v208_v63 = vadd.f32 %v205_v62, %v196_v61 }
 0x3a2   :  { %210 = vst [vmem:[#allocation5 + $0x8] sm:$0xff] %v208_v63 }
 0x3a3   :  { %327 = shalt.err (!%p324_p12)
}
 0x3a4   :  { %s328_s17 = scalar_lea.hbm %s438_s4, 256 }
 0x3a5   :  { %p329_p13 = scmp.ne.s32.totalorder %s438_s4, %s328_s17  ;;  %p332_p0 = scmp.lt.u32.totalorder %s328_s17, %s438_s4 }
 0x3a7   :  { %p334_p1 = pnand %p332_p0, %p329_p13 }
 0x3a9   :  { %337 = shalt.err (!%p334_p1)
}
 0x3aa   :  { %222 = dma.vmem_to_hbm [thread:$0]  %s217_s13, 256, %s438_s4, [#allocation4], %s343_s25, %s343_s25, %s344_s26  }
 0x3ab   :  { %340 = dma.done.wait [#allocation4], 256  }
 0x3ac   :  { %341 = vsyncadd [#allocation4], 4294967040 }
 0x3ad   :  { %226 = vsyncpa [#allocation3], 1 }
 0x3ae   :  { %227 = vsyncpa [#allocation4], 1 }

</bundles_post_ra>
